<compile_context>
chip_gen: v6e
topology: v6e:2x2x1
jax: 0.10.0
libtpu: 0.0.40
codegen_flags: <defaults>
</compile_context>

<pallas_src>
import functools

import jax
import jax.numpy as jnp
from jax import lax
from jax.experimental import pallas as pl
from jax.experimental.pallas import tpu as pltpu


def _scatter_kernel(flat_ref, feat_ref, out_ref, *, num_pillars: int, hw_tile: int):
    """One grid step == (batch element, BEV row-tile).

    flat_ref : SMEM (B, P) int32        scalar-prefetched flat BEV cell index
    feat_ref : VMEM (1, P, C)           lane-dense pillar features
    out_ref  : VMEM (1, hw_tile, C)     lane-dense BEV slab tile
    """
    b = pl.program_id(0)
    t = pl.program_id(1)
    tile_start = t * hw_tile

    # Zero the output tile once per grid step.
    out_ref[...] = jnp.zeros_like(out_ref)

    def body(p, carry):
        flat = flat_ref[b, p]                 # scalar SMEM read
        local = flat - tile_start
        in_tile = jnp.logical_and(local >= 0, local < hw_tile)

        @pl.when(in_tile)
        def _():
            # One contiguous row load + one row store per pillar.
            out_ref[0, pl.ds(local, 1), :] = feat_ref[0, pl.ds(p, 1), :]

        return carry

    unroll = 8 if num_pillars % 8 == 0 else (4 if num_pillars % 4 == 0 else 1)
    lax.fori_loop(0, num_pillars, body, 0, unroll=unroll)


def scatter_layer(pillar_features: jnp.ndarray,
                  coords: jnp.ndarray,
                  ny: int,
                  nx: int,
                  *,
                  ny_tile: int | None = None) -> jnp.ndarray:
    """Pallas equivalent of ScatterLayer.forward."""
    B, C, P = pillar_features.shape
    HW = ny * nx
    itemsize = jnp.dtype(pillar_features.dtype).itemsize

    if ny_tile is None:
        # Largest row-tile (a divisor of ny, with an 8-divisible flat extent
        # unless it is the full slab) that keeps the output tile under ~8 MiB,
        # so the double-buffered output fits the default scoped VMEM everywhere.
        budget = 8 * 1024 * 1024
        ny_tile = ny
        for d in range(ny, 0, -1):
            if ny % d != 0:
                continue
            if d != ny and (d * nx) % 8 != 0:
                continue
            if d * nx * C * itemsize <= budget or d == 1:
                ny_tile = d
                break
    assert ny % ny_tile == 0, "ny_tile must divide ny"
    hw_tile = ny_tile * nx
    assert hw_tile == HW or hw_tile % 8 == 0, "row-tile flat extent must be 8-aligned"
    n_tiles = ny // ny_tile

    coords = coords.astype(jnp.int32)
    # Lane-dense flat index table (B, P): y * nx + x.
    flat_idx = coords[..., 1] * nx + coords[..., 0]

    # Lane-dense features (B, P, C): one pillar == one row.
    feat_t = jnp.transpose(pillar_features, (0, 2, 1))

    kernel = functools.partial(_scatter_kernel, num_pillars=P, hw_tile=hw_tile)

    out_flat = pl.pallas_call(
        kernel,
        out_shape=jax.ShapeDtypeStruct((B, HW, C), pillar_features.dtype),
        grid_spec=pltpu.PrefetchScalarGridSpec(
            num_scalar_prefetch=1,                # flat_idx -> SMEM
            grid=(B, n_tiles),
            in_specs=[
                pl.BlockSpec((1, P, C), lambda b, t, flat_ref: (b, 0, 0)),
            ],
            out_specs=pl.BlockSpec((1, hw_tile, C), lambda b, t, flat_ref: (b, t, 0)),
        ),
        compiler_params=pltpu.CompilerParams(
            dimension_semantics=("parallel", "parallel"),
        ),
    )(flat_idx, feat_t)

    # (B, HW, C) -> (B, C, ny, nx)
    return jnp.transpose(out_flat, (0, 2, 1)).reshape(B, C, ny, nx)


def _reference_scatter(pillar_features, coords, ny, nx):
    """Pure-JAX reference mirroring the PyTorch forward.

    NumPy/JAX mixed advanced indexing moves the advanced axes to the front, so
    the update value must be (P, C) == pillar_features[b].T (PyTorch keeps the
    adjacent advanced axes in place and assigns (C, P) directly).
    """
    B, C, P = pillar_features.shape
    bev = jnp.zeros((B, C, ny, nx), dtype=pillar_features.dtype)
    for b in range(B):
        bev = bev.at[b, :, coords[b, :, 1], coords[b, :, 0]].set(pillar_features[b].T)
    return bev


if __name__ == "__main__":
    # Small shapes consistent with the module: batch=2, num_features=4,
    # num_pillars=8, BEV grid 16x16.
    B, C, P = 2, 4, 8
    ny, nx = 16, 16

    key = jax.random.PRNGKey(0)
    k_feat, k_coord = jax.random.split(key)

    pillar_features = jax.random.normal(k_feat, (B, C, P), dtype=jnp.float32)

    # Unique (x, y) coordinates per pillar: with duplicates the winner of
    # .at[].set in the reference is not guaranteed to match the kernel's
    # sequential last-write-wins policy.
    flat_cells = jax.random.permutation(k_coord, ny * nx)[: B * P].reshape(B, P)
    coords = jnp.stack([flat_cells % nx, flat_cells // nx], axis=-1).astype(jnp.int32)

    # Exercise the row-tiled path explicitly (2 tiles of 8 BEV rows each).
    out = scatter_layer(pillar_features, coords, ny, nx, ny_tile=8)
    out = jax.block_until_ready(out)

    ref = _reference_scatter(pillar_features, coords, ny, nx)
    assert out.shape == (B, C, ny, nx)
    assert out.dtype == pillar_features.dtype
    assert jnp.allclose(out, ref, atol=1e-6, rtol=1e-6)

    print("KERNEL_OK")
</pallas_src>

<mosaic_0001>
module attributes {stable_mosaic.version = 11 : i64} {
  func.func @_scatter_kernel(%arg0: i32, %arg1: i32, %arg2: memref<2x8xi32, #tpu.memory_space<smem>>, %arg3: memref<1x8x4xf32, #tpu.memory_space<vmem>>, %arg4: memref<1x128x4xf32, #tpu.memory_space<vmem>>) attributes {dimension_semantics = [#tpu.dimension_semantics<parallel>, #tpu.dimension_semantics<parallel>], iteration_bounds = array<i64: 2, 2>, scalar_prefetch = 1 : i64, scratch_operands = 0 : i64, tpu.core_type = #tpu.core_type<tc>, window_params = [{transform_indices = @transform_0, window_bounds = array<i64: 1, 8, 4>}, {transform_indices = @transform_1, window_bounds = array<i64: 1, 128, 4>}]} {
    %c128_i32 = arith.constant 128 : i32
    %0 = arith.muli %arg1, %c128_i32 : i32
    %cst = arith.constant 0.000000e+00 : f32
    %1 = vector.broadcast %cst : f32 to vector<1x128x4xf32>
    %c0 = arith.constant 0 : index
    %c0_0 = arith.constant 0 : index
    %c0_1 = arith.constant 0 : index
    %2 = vector.load %arg4[%c0, %c0_0, %c0_1] : memref<1x128x4xf32, #tpu.memory_space<vmem>>, vector<1x128x4xf32>
    tpu.vector_store %arg4[%c0, %c0_0, %c0_1], %1 {strides = array<i32>} : memref<1x128x4xf32, #tpu.memory_space<vmem>>, vector<1x128x4xf32>,
    %c0_i32 = arith.constant 0 : i32
    %3 = arith.index_cast %arg0 : i32 to index
    %4 = arith.index_cast %c0_i32 : i32 to index
    %5 = memref.load %arg2[%3, %4] : memref<2x8xi32, #tpu.memory_space<smem>>
    %6 = arith.subi %5, %0 : i32
    %c0_i32_2 = arith.constant 0 : i32
    %7 = arith.cmpi sge, %6, %c0_i32_2 : i32
    %c128_i32_3 = arith.constant 128 : i32
    %8 = arith.cmpi slt, %6, %c128_i32_3 : i32
    %9 = arith.andi %7, %8 : i1
    %10 = arith.extui %9 : i1 to i32
    %c0_i32_4 = arith.constant 0 : i32
    %11 = arith.cmpi ne, %10, %c0_i32_4 : i32
    scf.if %11 {
      %c0_26 = arith.constant 0 : index
      %75 = arith.index_cast %c0_i32 : i32 to index
      %c0_27 = arith.constant 0 : index
      %76 = vector.load %arg3[%c0_26, %75, %c0_27] : memref<1x8x4xf32, #tpu.memory_space<vmem>>, vector<1x1x4xf32>
      %77 = vector.shape_cast %76 : vector<1x1x4xf32> to vector<1x4xf32>
      %c0_28 = arith.constant 0 : index
      %78 = arith.index_cast %6 : i32 to index
      %c0_29 = arith.constant 0 : index
      %79 = vector.load %arg4[%c0_28, %78, %c0_29] : memref<1x128x4xf32, #tpu.memory_space<vmem>>, vector<1x1x4xf32>
      %80 = vector.shape_cast %79 : vector<1x1x4xf32> to vector<1x4xf32>
      %81 = vector.shape_cast %77 : vector<1x4xf32> to vector<1x1x4xf32>
      tpu.vector_store %arg4[%c0_28, %78, %c0_29], %81 {strides = array<i32>} : memref<1x128x4xf32, #tpu.memory_space<vmem>>, vector<1x1x4xf32>,
    } else {
    }
    %c1_i32 = arith.constant 1 : i32
    %12 = arith.index_cast %arg0 : i32 to index
    %13 = arith.index_cast %c1_i32 : i32 to index
    %14 = memref.load %arg2[%12, %13] : memref<2x8xi32, #tpu.memory_space<smem>>
    %15 = arith.subi %14, %0 : i32
    %c0_i32_5 = arith.constant 0 : i32
    %16 = arith.cmpi sge, %15, %c0_i32_5 : i32
    %c128_i32_6 = arith.constant 128 : i32
    %17 = arith.cmpi slt, %15, %c128_i32_6 : i32
    %18 = arith.andi %16, %17 : i1
    %19 = arith.extui %18 : i1 to i32
    %c0_i32_7 = arith.constant 0 : i32
    %20 = arith.cmpi ne, %19, %c0_i32_7 : i32
    scf.if %20 {
      %c0_26 = arith.constant 0 : index
      %75 = arith.index_cast %c1_i32 : i32 to index
      %c0_27 = arith.constant 0 : index
      %76 = vector.load %arg3[%c0_26, %75, %c0_27] : memref<1x8x4xf32, #tpu.memory_space<vmem>>, vector<1x1x4xf32>
      %77 = vector.shape_cast %76 : vector<1x1x4xf32> to vector<1x4xf32>
      %c0_28 = arith.constant 0 : index
      %78 = arith.index_cast %15 : i32 to index
      %c0_29 = arith.constant 0 : index
      %79 = vector.load %arg4[%c0_28, %78, %c0_29] : memref<1x128x4xf32, #tpu.memory_space<vmem>>, vector<1x1x4xf32>
      %80 = vector.shape_cast %79 : vector<1x1x4xf32> to vector<1x4xf32>
      %81 = vector.shape_cast %77 : vector<1x4xf32> to vector<1x1x4xf32>
      tpu.vector_store %arg4[%c0_28, %78, %c0_29], %81 {strides = array<i32>} : memref<1x128x4xf32, #tpu.memory_space<vmem>>, vector<1x1x4xf32>,
    } else {
    }
    %c2_i32 = arith.constant 2 : i32
    %21 = arith.index_cast %arg0 : i32 to index
    %22 = arith.index_cast %c2_i32 : i32 to index
    %23 = memref.load %arg2[%21, %22] : memref<2x8xi32, #tpu.memory_space<smem>>
    %24 = arith.subi %23, %0 : i32
    %c0_i32_8 = arith.constant 0 : i32
    %25 = arith.cmpi sge, %24, %c0_i32_8 : i32
    %c128_i32_9 = arith.constant 128 : i32
    %26 = arith.cmpi slt, %24, %c128_i32_9 : i32
    %27 = arith.andi %25, %26 : i1
    %28 = arith.extui %27 : i1 to i32
    %c0_i32_10 = arith.constant 0 : i32
    %29 = arith.cmpi ne, %28, %c0_i32_10 : i32
    scf.if %29 {
      %c0_26 = arith.constant 0 : index
      %75 = arith.index_cast %c2_i32 : i32 to index
      %c0_27 = arith.constant 0 : index
      %76 = vector.load %arg3[%c0_26, %75, %c0_27] : memref<1x8x4xf32, #tpu.memory_space<vmem>>, vector<1x1x4xf32>
      %77 = vector.shape_cast %76 : vector<1x1x4xf32> to vector<1x4xf32>
      %c0_28 = arith.constant 0 : index
      %78 = arith.index_cast %24 : i32 to index
      %c0_29 = arith.constant 0 : index
      %79 = vector.load %arg4[%c0_28, %78, %c0_29] : memref<1x128x4xf32, #tpu.memory_space<vmem>>, vector<1x1x4xf32>
      %80 = vector.shape_cast %79 : vector<1x1x4xf32> to vector<1x4xf32>
      %81 = vector.shape_cast %77 : vector<1x4xf32> to vector<1x1x4xf32>
      tpu.vector_store %arg4[%c0_28, %78, %c0_29], %81 {strides = array<i32>} : memref<1x128x4xf32, #tpu.memory_space<vmem>>, vector<1x1x4xf32>,
    } else {
    }
    %c3_i32 = arith.constant 3 : i32
    %30 = arith.index_cast %arg0 : i32 to index
    %31 = arith.index_cast %c3_i32 : i32 to index
    %32 = memref.load %arg2[%30, %31] : memref<2x8xi32, #tpu.memory_space<smem>>
    %33 = arith.subi %32, %0 : i32
    %c0_i32_11 = arith.constant 0 : i32
    %34 = arith.cmpi sge, %33, %c0_i32_11 : i32
    %c128_i32_12 = arith.constant 128 : i32
    %35 = arith.cmpi slt, %33, %c128_i32_12 : i32
    %36 = arith.andi %34, %35 : i1
    %37 = arith.extui %36 : i1 to i32
    %c0_i32_13 = arith.constant 0 : i32
    %38 = arith.cmpi ne, %37, %c0_i32_13 : i32
    scf.if %38 {
      %c0_26 = arith.constant 0 : index
      %75 = arith.index_cast %c3_i32 : i32 to index
      %c0_27 = arith.constant 0 : index
      %76 = vector.load %arg3[%c0_26, %75, %c0_27] : memref<1x8x4xf32, #tpu.memory_space<vmem>>, vector<1x1x4xf32>
      %77 = vector.shape_cast %76 : vector<1x1x4xf32> to vector<1x4xf32>
      %c0_28 = arith.constant 0 : index
      %78 = arith.index_cast %33 : i32 to index
      %c0_29 = arith.constant 0 : index
      %79 = vector.load %arg4[%c0_28, %78, %c0_29] : memref<1x128x4xf32, #tpu.memory_space<vmem>>, vector<1x1x4xf32>
      %80 = vector.shape_cast %79 : vector<1x1x4xf32> to vector<1x4xf32>
      %81 = vector.shape_cast %77 : vector<1x4xf32> to vector<1x1x4xf32>
      tpu.vector_store %arg4[%c0_28, %78, %c0_29], %81 {strides = array<i32>} : memref<1x128x4xf32, #tpu.memory_space<vmem>>, vector<1x1x4xf32>,
    } else {
    }
    %c4_i32 = arith.constant 4 : i32
    %39 = arith.index_cast %arg0 : i32 to index
    %40 = arith.index_cast %c4_i32 : i32 to index
    %41 = memref.load %arg2[%39, %40] : memref<2x8xi32, #tpu.memory_space<smem>>
    %42 = arith.subi %41, %0 : i32
    %c0_i32_14 = arith.constant 0 : i32
    %43 = arith.cmpi sge, %42, %c0_i32_14 : i32
    %c128_i32_15 = arith.constant 128 : i32
    %44 = arith.cmpi slt, %42, %c128_i32_15 : i32
    %45 = arith.andi %43, %44 : i1
    %46 = arith.extui %45 : i1 to i32
    %c0_i32_16 = arith.constant 0 : i32
    %47 = arith.cmpi ne, %46, %c0_i32_16 : i32
    scf.if %47 {
      %c0_26 = arith.constant 0 : index
      %75 = arith.index_cast %c4_i32 : i32 to index
      %c0_27 = arith.constant 0 : index
      %76 = vector.load %arg3[%c0_26, %75, %c0_27] : memref<1x8x4xf32, #tpu.memory_space<vmem>>, vector<1x1x4xf32>
      %77 = vector.shape_cast %76 : vector<1x1x4xf32> to vector<1x4xf32>
      %c0_28 = arith.constant 0 : index
      %78 = arith.index_cast %42 : i32 to index
      %c0_29 = arith.constant 0 : index
      %79 = vector.load %arg4[%c0_28, %78, %c0_29] : memref<1x128x4xf32, #tpu.memory_space<vmem>>, vector<1x1x4xf32>
      %80 = vector.shape_cast %79 : vector<1x1x4xf32> to vector<1x4xf32>
      %81 = vector.shape_cast %77 : vector<1x4xf32> to vector<1x1x4xf32>
      tpu.vector_store %arg4[%c0_28, %78, %c0_29], %81 {strides = array<i32>} : memref<1x128x4xf32, #tpu.memory_space<vmem>>, vector<1x1x4xf32>,
    } else {
    }
    %c5_i32 = arith.constant 5 : i32
    %48 = arith.index_cast %arg0 : i32 to index
    %49 = arith.index_cast %c5_i32 : i32 to index
    %50 = memref.load %arg2[%48, %49] : memref<2x8xi32, #tpu.memory_space<smem>>
    %51 = arith.subi %50, %0 : i32
    %c0_i32_17 = arith.constant 0 : i32
    %52 = arith.cmpi sge, %51, %c0_i32_17 : i32
    %c128_i32_18 = arith.constant 128 : i32
    %53 = arith.cmpi slt, %51, %c128_i32_18 : i32
    %54 = arith.andi %52, %53 : i1
    %55 = arith.extui %54 : i1 to i32
    %c0_i32_19 = arith.constant 0 : i32
    %56 = arith.cmpi ne, %55, %c0_i32_19 : i32
    scf.if %56 {
      %c0_26 = arith.constant 0 : index
      %75 = arith.index_cast %c5_i32 : i32 to index
      %c0_27 = arith.constant 0 : index
      %76 = vector.load %arg3[%c0_26, %75, %c0_27] : memref<1x8x4xf32, #tpu.memory_space<vmem>>, vector<1x1x4xf32>
      %77 = vector.shape_cast %76 : vector<1x1x4xf32> to vector<1x4xf32>
      %c0_28 = arith.constant 0 : index
      %78 = arith.index_cast %51 : i32 to index
      %c0_29 = arith.constant 0 : index
      %79 = vector.load %arg4[%c0_28, %78, %c0_29] : memref<1x128x4xf32, #tpu.memory_space<vmem>>, vector<1x1x4xf32>
      %80 = vector.shape_cast %79 : vector<1x1x4xf32> to vector<1x4xf32>
      %81 = vector.shape_cast %77 : vector<1x4xf32> to vector<1x1x4xf32>
      tpu.vector_store %arg4[%c0_28, %78, %c0_29], %81 {strides = array<i32>} : memref<1x128x4xf32, #tpu.memory_space<vmem>>, vector<1x1x4xf32>,
    } else {
    }
    %c6_i32 = arith.constant 6 : i32
    %57 = arith.index_cast %arg0 : i32 to index
    %58 = arith.index_cast %c6_i32 : i32 to index
    %59 = memref.load %arg2[%57, %58] : memref<2x8xi32, #tpu.memory_space<smem>>
    %60 = arith.subi %59, %0 : i32
    %c0_i32_20 = arith.constant 0 : i32
    %61 = arith.cmpi sge, %60, %c0_i32_20 : i32
    %c128_i32_21 = arith.constant 128 : i32
    %62 = arith.cmpi slt, %60, %c128_i32_21 : i32
    %63 = arith.andi %61, %62 : i1
    %64 = arith.extui %63 : i1 to i32
    %c0_i32_22 = arith.constant 0 : i32
    %65 = arith.cmpi ne, %64, %c0_i32_22 : i32
    scf.if %65 {
      %c0_26 = arith.constant 0 : index
      %75 = arith.index_cast %c6_i32 : i32 to index
      %c0_27 = arith.constant 0 : index
      %76 = vector.load %arg3[%c0_26, %75, %c0_27] : memref<1x8x4xf32, #tpu.memory_space<vmem>>, vector<1x1x4xf32>
      %77 = vector.shape_cast %76 : vector<1x1x4xf32> to vector<1x4xf32>
      %c0_28 = arith.constant 0 : index
      %78 = arith.index_cast %60 : i32 to index
      %c0_29 = arith.constant 0 : index
      %79 = vector.load %arg4[%c0_28, %78, %c0_29] : memref<1x128x4xf32, #tpu.memory_space<vmem>>, vector<1x1x4xf32>
      %80 = vector.shape_cast %79 : vector<1x1x4xf32> to vector<1x4xf32>
      %81 = vector.shape_cast %77 : vector<1x4xf32> to vector<1x1x4xf32>
      tpu.vector_store %arg4[%c0_28, %78, %c0_29], %81 {strides = array<i32>} : memref<1x128x4xf32, #tpu.memory_space<vmem>>, vector<1x1x4xf32>,
    } else {
    }
    %c7_i32 = arith.constant 7 : i32
    %66 = arith.index_cast %arg0 : i32 to index
    %67 = arith.index_cast %c7_i32 : i32 to index
    %68 = memref.load %arg2[%66, %67] : memref<2x8xi32, #tpu.memory_space<smem>>
    %69 = arith.subi %68, %0 : i32
    %c0_i32_23 = arith.constant 0 : i32
    %70 = arith.cmpi sge, %69, %c0_i32_23 : i32
    %c128_i32_24 = arith.constant 128 : i32
    %71 = arith.cmpi slt, %69, %c128_i32_24 : i32
    %72 = arith.andi %70, %71 : i1
    %73 = arith.extui %72 : i1 to i32
    %c0_i32_25 = arith.constant 0 : i32
    %74 = arith.cmpi ne, %73, %c0_i32_25 : i32
    scf.if %74 {
      %c0_26 = arith.constant 0 : index
      %75 = arith.index_cast %c7_i32 : i32 to index
      %c0_27 = arith.constant 0 : index
      %76 = vector.load %arg3[%c0_26, %75, %c0_27] : memref<1x8x4xf32, #tpu.memory_space<vmem>>, vector<1x1x4xf32>
      %77 = vector.shape_cast %76 : vector<1x1x4xf32> to vector<1x4xf32>
      %c0_28 = arith.constant 0 : index
      %78 = arith.index_cast %69 : i32 to index
      %c0_29 = arith.constant 0 : index
      %79 = vector.load %arg4[%c0_28, %78, %c0_29] : memref<1x128x4xf32, #tpu.memory_space<vmem>>, vector<1x1x4xf32>
      %80 = vector.shape_cast %79 : vector<1x1x4xf32> to vector<1x4xf32>
      %81 = vector.shape_cast %77 : vector<1x4xf32> to vector<1x1x4xf32>
      tpu.vector_store %arg4[%c0_28, %78, %c0_29], %81 {strides = array<i32>} : memref<1x128x4xf32, #tpu.memory_space<vmem>>, vector<1x1x4xf32>,
    } else {
    }
    %c8_i32 = arith.constant 8 : i32
    return
  }
  func.func @transform_0(%arg0: i32, %arg1: i32, %arg2: memref<2x8xi32, #tpu.memory_space<smem>>) -> (i32, i32, i32) {
    %c0_i32 = arith.constant 0 : i32
    %c0_i32_0 = arith.constant 0 : i32
    %c0_i32_1 = arith.constant 0 : i32
    return %arg0, %c0_i32, %c0_i32_0 : i32, i32, i32
  }
  func.func @transform_1(%arg0: i32, %arg1: i32, %arg2: memref<2x8xi32, #tpu.memory_space<smem>>) -> (i32, i32, i32) {
    %c0_i32 = arith.constant 0 : i32
    %c0_i32_0 = arith.constant 0 : i32
    return %arg0, %arg1, %c0_i32 : i32, i32, i32
  }
}

</mosaic_0001>

<bundles_post_ra>
// kernel: tpu_custom_call.1
= control target key start
LH: loop header
LB: loop body
LE: loop exit
PB: predicated region body
PF: predicated region fallthrough
CT: control target
= control target key end

     0   :  { %s614_s0 = inlined_call_operand.vmem [shape: s32[2,8], index: 0, kind: input, shape index: {}]   ;;  %s615_s1 = inlined_call_operand.vmem [shape: f32[2,8,4], index: 1, kind: input, shape index: {}]   ;;  %s616_s2 = inlined_call_operand.vmem [shape: f32[2,256,4], index: 2, kind: output, shape index: {}]  }
   0x1   :  { %s7_s11 = sshll.u32 %s614_s0, 4  ;;  %s8_s11 = int_to_ptr.vmem [resolvable:$true] %s7_s11 }
   0x2   :  { %s413_s12 = scalar_lea.vmem %s8_s11, 32  ;;  %p418_p1 = scmp.lt.s32.totalorder %s8_s11, %s8_s11 }
   0x3   :  { %p414_p0 = scmp.ne.s32.totalorder %s8_s11, %s413_s12  ;;  %p419_p2 = scmp.lt.s32.totalorder %s413_s12, %s413_s12 }
   0x5   :  { %p420_p3 = por %p419_p2, %p418_p1 }
   0x7   :  { %p421_p4 = pnand %p420_p3, %p414_p0 }
   0x9   :  { %424 = shalt.err (!%p421_p4)  }
   0xa   :  { %s467_s13 = smov [#allocation3]  }
   0xb   :  { %10 = dma.vmem_to_smem %s8_s11, 32, %s467_s13, [#allocation2] }
   0xc   :  { %445 = dma.done.wait [#allocation2], 32 }
   0xd   :  { %446 = vsyncadd [#allocation2], 4294967264 }
   0xe   :  { %12 = sfence }
   0xf   :  { %s487_s14 = smov 0   ;;  %s489_s15 = smov 0  }
  0x10   :  { %s491_s16 = smov 0   ;;  %s493_s0 = smov 0  }
  0x11   :  { %s495_s17 = smov 0  }
  0x12 LB: > { %s27_s18 = sadd.s32 1, %s457_s16  ;;  %s30_s19 = sadd.s32 1, %s461_s0  ;;  %s465_s17 = sphi %s495_s17, %s18_s17   ;;  %s461_s0 = sphi %s493_s0, %s620_s0   ;;  %s457_s16 = sphi %s491_s16, %s619_s16   ;;  %s453_s15 = sphi %s489_s15, %s618_s15   ;;  %s449_s14 = sphi %s487_s14, %s617_s14  }
  0x13   : > { %p28_p5 = scmp.ge.s32.totalorder %s27_s18, 2  ;;  %p362_p6 = scmp.ge.s32.totalorder %s465_s17, 1 }
  0x14   : > { %p107_p7 = scmp.lt.s32.totalorder %s465_s17, 5 }
  0x15   : > { %s622_s18 = smov (%p28_p5, %s27_s18), 0  ;;  %s624_s19 = smov (!%p28_p5, %s30_s19), %s461_s0 }
  0x16   : > { %p108_p8 = pnand %p362_p6, %p107_p7  ;;  %p32_p9 = scmp.ge.s32.totalorder %s624_s19, 2 }
  0x17   : > { %p130_p10 = scmp.lt.s32.totalorder (!%p108_p8), %s453_s15, 1  ;;  %s364_s20 = sshll.u32 (!%p108_p8), %s449_s14, 4 }
  0x18   : > { %s626_s19 = smov (%p32_p9, %s624_s19), 0  ;;  %111 = sbr.rel (%p108_p8) target bundleno = 179 (0xb3), region = 24 }
  0x19   : > { %p137_p11 = scmp.lt.s32.totalorder (!%p108_p8), %s364_s20, 31  ;;  %s525_s29 = sshll.u32 (!%p108_p8), %s453_s15, 7 }
  0x1a   : > { %s163_s5 = sld [smem:[#allocation3 + %s525_s29]] (!%p108_p8)  ;;  %s566_s6 = sshll.u32 (!%p108_p8), %s449_s14, 7 }
  0x1d   : > { %s131_s21 = scalar_select %p130_p10, %s453_s15, 1  ;;  %vm145_vm0 = vcmask 31744   ;;  %v468_v0 = vmov 0.0  }
  0x1e   : > { %s628_s20 = smov (!%p137_p11, %s364_s20), 31 }
  0x1f   : > { %s363_s22 = sshll.u32 %s131_s21, 3  ;;  %s365_s23 = sshll.u32 %s131_s21, 5 }
  0x20   : > { %s523_s26 = scalar_lea.vmem %s615_s1, %s363_s22  ;;  %s140_s27 = sadd.s32 %s365_s23, %s628_s20 }
  0x21   : > { %s366_s28 = sshll.u32 %s140_s27, 3  ;;  %s164_s7 = ssub.s32 %s163_s5, %s566_s6 }
  0x22   : > { %s530_s4 = scalar_lea.vmem %s616_s2, %s366_s28  ;;  %p165_p12 = scmp.ge.s32.totalorder %s164_s7, 0 }
  0x23   : > { %146 = vst.msk [vmem:[%s530_s4] sm:$0xff] %vm145_vm0, %v468_v0  ;;  %147 = vst.msk [vmem:[%s530_s4 + $0x8] sm:$0xff] %vm145_vm0, %v468_v0  ;;  %p166_p13 = scmp.lt.s32.totalorder %s164_s7, 128 }
  0x24   : > { %148 = vst.msk [vmem:[%s530_s4 + $0x10] sm:$0xff] %vm145_vm0, %v468_v0  ;;  %149 = vst.msk [vmem:[%s530_s4 + $0x18] sm:$0xff] %vm145_vm0, %v468_v0 }
  0x25   : > { %150 = vst.msk [vmem:[%s530_s4 + $0x20] sm:$0xff] %vm145_vm0, %v468_v0  ;;  %151 = vst.msk [vmem:[%s530_s4 + $0x28] sm:$0xff] %vm145_vm0, %v468_v0  ;;  %p167_p0 = pnand %p166_p13, %p165_p12 }
  0x26   : > { %152 = vst.msk [vmem:[%s530_s4 + $0x30] sm:$0xff] %vm145_vm0, %v468_v0  ;;  %153 = vst.msk [vmem:[%s530_s4 + $0x38] sm:$0xff] %vm145_vm0, %v468_v0  ;;  %s172_s8 = scalar_lea.vmem (!%p167_p0), %s530_s4, %s164_s7 }
  0x27   : > { %154 = vst.msk [vmem:[%s530_s4 + $0x40] sm:$0xff] %vm145_vm0, %v468_v0  ;;  %155 = vst.msk [vmem:[%s530_s4 + $0x48] sm:$0xff] %vm145_vm0, %v468_v0  ;;  %170 = sbr.rel (%p167_p0) target bundleno = 46 (0x2e), region = 28 }
  0x28   : > { %156 = vst.msk [vmem:[%s530_s4 + $0x50] sm:$0xff] %vm145_vm0, %v468_v0  ;;  %157 = vst.msk [vmem:[%s530_s4 + $0x58] sm:$0xff] %vm145_vm0, %v468_v0 }
  0x29   : > { %158 = vst.msk [vmem:[%s530_s4 + $0x60] sm:$0xff] %vm145_vm0, %v468_v0  ;;  %159 = vst.msk [vmem:[%s530_s4 + $0x68] sm:$0xff] %vm145_vm0, %v468_v0 }
  0x2a   : > { %160 = vst.msk [vmem:[%s530_s4 + $0x70] sm:$0xff] %vm145_vm0, %v468_v0  ;;  %161 = vst.msk [vmem:[%s530_s4 + $0x78] sm:$0xff] %vm145_vm0, %v468_v0 }
  0x2c   : > { %v171_v1 = vld [vmem:[%s523_s26] sm:$0x1]  ;;  %vm173_vm1 = vcmask 24576  }
  0x2d   : > { %174 = vst.msk [vmem:[%s172_s8] sm:$0x1] %vm173_vm1, %v171_v1 }
  0x2e PF: > { %s175_s9 = sadd.s32 1, %s525_s29 }
  0x2f   : > { %s176_s10 = sld [smem:[#allocation3 + %s175_s9]] }
  0x35   : > { %s177_s11 = ssub.s32 %s176_s10, %s566_s6 }
  0x36   : > { %p178_p1 = scmp.ge.s32.totalorder %s177_s11, 0  ;;  %p179_p2 = scmp.lt.s32.totalorder %s177_s11, 128 }
  0x38   : > { %p180_p3 = pnand %p179_p2, %p178_p1 }
  0x39   : > { %s185_s12 = scalar_lea.vmem (!%p180_p3), %s530_s4, %s177_s11 }
  0x3a   : > { %183 = sbr.rel (%p180_p3) target bundleno = 65 (0x41), region = 32 }
  0x3f   : > { %v184_v2 = vld [vmem:[%s523_s26 + $0x1] sm:$0x1]  ;;  %vm186_vm2 = vcmask 24576  }
  0x40   : > { %187 = vst.msk [vmem:[%s185_s12] sm:$0x1] %vm186_vm2, %v184_v2 }
  0x41 PF: > { %s188_s13 = sadd.s32 2, %s525_s29 }
  0x42   : > { %s189_s14 = sld [smem:[#allocation3 + %s188_s13]] }
  0x48   : > { %s190_s15 = ssub.s32 %s189_s14, %s566_s6 }
  0x49   : > { %p191_p4 = scmp.ge.s32.totalorder %s190_s15, 0  ;;  %p192_p5 = scmp.lt.s32.totalorder %s190_s15, 128 }
  0x4b   : > { %p193_p6 = pnand %p192_p5, %p191_p4 }
  0x4c   : > { %s198_s20 = scalar_lea.vmem (!%p193_p6), %s530_s4, %s190_s15 }
  0x4d   : > { %196 = sbr.rel (%p193_p6) target bundleno = 84 (0x54), region = 36 }
  0x52   : > { %v197_v3 = vld [vmem:[%s523_s26 + $0x2] sm:$0x1]  ;;  %vm199_vm3 = vcmask 24576  }
  0x53   : > { %200 = vst.msk [vmem:[%s198_s20] sm:$0x1] %vm199_vm3, %v197_v3 }
  0x54 PF: > { %s201_s21 = sadd.s32 3, %s525_s29 }
  0x55   : > { %s202_s22 = sld [smem:[#allocation3 + %s201_s21]] }
  0x5b   : > { %s203_s23 = ssub.s32 %s202_s22, %s566_s6 }
  0x5c   : > { %p204_p7 = scmp.ge.s32.totalorder %s203_s23, 0  ;;  %p205_p8 = scmp.lt.s32.totalorder %s203_s23, 128 }
  0x5e   : > { %p206_p9 = pnand %p205_p8, %p204_p7 }
  0x5f   : > { %s211_s24 = scalar_lea.vmem (!%p206_p9), %s530_s4, %s203_s23 }
  0x60   : > { %209 = sbr.rel (%p206_p9) target bundleno = 103 (0x67), region = 40 }
  0x65   : > { %v210_v4 = vld [vmem:[%s523_s26 + $0x3] sm:$0x1]  ;;  %vm212_vm4 = vcmask 24576  }
  0x66   : > { %213 = vst.msk [vmem:[%s211_s24] sm:$0x1] %vm212_vm4, %v210_v4 }
  0x67 PF: > { %s214_s25 = sadd.s32 4, %s525_s29 }
  0x68   : > { %s215_s27 = sld [smem:[#allocation3 + %s214_s25]] }
  0x6e   : > { %s216_s28 = ssub.s32 %s215_s27, %s566_s6 }
  0x6f   : > { %p217_p10 = scmp.ge.s32.totalorder %s216_s28, 0  ;;  %p218_p11 = scmp.lt.s32.totalorder %s216_s28, 128 }
  0x71   : > { %p219_p12 = pnand %p218_p11, %p217_p10 }
  0x72   : > { %s224_s30 = scalar_lea.vmem (!%p219_p12), %s530_s4, %s216_s28 }
  0x73   : > { %222 = sbr.rel (%p219_p12) target bundleno = 122 (0x7a), region = 44 }
  0x78   : > { %v223_v5 = vld [vmem:[%s523_s26 + $0x4] sm:$0x1]  ;;  %vm225_vm5 = vcmask 24576  }
  0x79   : > { %226 = vst.msk [vmem:[%s224_s30] sm:$0x1] %vm225_vm5, %v223_v5 }
  0x7a PF: > { %s227_s3 = sadd.s32 5, %s525_s29 }
  0x7b   : > { %s228_s5 = sld [smem:[#allocation3 + %s227_s3]] }
  0x81   : > { %s229_s7 = ssub.s32 %s228_s5, %s566_s6 }
  0x82   : > { %p230_p13 = scmp.ge.s32.totalorder %s229_s7, 0  ;;  %p231_p0 = scmp.lt.s32.totalorder %s229_s7, 128 }
  0x84   : > { %p232_p1 = pnand %p231_p0, %p230_p13 }
  0x85   : > { %s237_s8 = scalar_lea.vmem (!%p232_p1), %s530_s4, %s229_s7 }
  0x86   : > { %235 = sbr.rel (%p232_p1) target bundleno = 141 (0x8d), region = 48 }
  0x8b   : > { %v236_v6 = vld [vmem:[%s523_s26 + $0x5] sm:$0x1]  ;;  %vm238_vm6 = vcmask 24576  }
  0x8c   : > { %239 = vst.msk [vmem:[%s237_s8] sm:$0x1] %vm238_vm6, %v236_v6 }
  0x8d PF: > { %s240_s9 = sadd.s32 6, %s525_s29 }
  0x8e   : > { %s241_s10 = sld [smem:[#allocation3 + %s240_s9]] }
  0x94   : > { %s242_s11 = ssub.s32 %s241_s10, %s566_s6 }
  0x95   : > { %p243_p2 = scmp.ge.s32.totalorder %s242_s11, 0  ;;  %p244_p3 = scmp.lt.s32.totalorder %s242_s11, 128 }
  0x97   : > { %p245_p4 = pnand %p244_p3, %p243_p2 }
  0x98   : > { %s250_s12 = scalar_lea.vmem (!%p245_p4), %s530_s4, %s242_s11 }
  0x99   : > { %248 = sbr.rel (%p245_p4) target bundleno = 160 (0xa0), region = 52 }
  0x9e   : > { %v249_v7 = vld [vmem:[%s523_s26 + $0x6] sm:$0x1]  ;;  %vm251_vm7 = vcmask 24576  }
  0x9f   : > { %252 = vst.msk [vmem:[%s250_s12] sm:$0x1] %vm251_vm7, %v249_v7 }
  0xa0 PF: > { %s253_s13 = sadd.s32 7, %s525_s29 }
  0xa1   : > { %s254_s14 = sld [smem:[#allocation3 + %s253_s13]] }
  0xa7   : > { %s255_s15 = ssub.s32 %s254_s14, %s566_s6 }
  0xa8   : > { %p256_p5 = scmp.ge.s32.totalorder %s255_s15, 0  ;;  %p257_p6 = scmp.lt.s32.totalorder %s255_s15, 128 }
  0xaa   : > { %p258_p7 = pnand %p257_p6, %p256_p5 }
  0xab   : > { %s263_s20 = scalar_lea.vmem (!%p258_p7), %s530_s4, %s255_s15 }
  0xac   : > { %261 = sbr.rel (%p258_p7) target bundleno = 179 (0xb3), region = 56 }
  0xb1   : > { %v262_v8 = vld [vmem:[%s523_s26 + $0x7] sm:$0x1]  ;;  %vm264_vm8 = vcmask 24576  }
  0xb2   : > { %265 = vst.msk [vmem:[%s263_s20] sm:$0x1] %vm264_vm8, %v262_v8 }
  0xb3 PF: > { %s18_s17 = sadd.s32 1, %s465_s17   ;;  %s617_s14 = smov %s457_s16 }
  0xb4   : > { %p15_p8 = scmp.ge.s32.totalorder %s18_s17, 6   ;;  %s618_s15 = smov %s461_s0 }
  0xb5   : > { %s619_s16 = smov %s622_s18  ;;  %s620_s0 = smov %s626_s19 }
  0xb6   :  { %17 = sbr.rel (!%p15_p8) target bundleno = 18 (0x12), region = 94 }

</bundles_post_ra>
